<compile_context>
chip_gen: v7x
topology: tpu7x:2x2x1
jax: 0.10.0
libtpu: 0.0.40
codegen_flags: <defaults>
</compile_context>

<pallas_src>
import functools
import math

import numpy as np
import jax
import jax.numpy as jnp
from jax import lax
from jax.experimental import pallas as pl
from jax.experimental.pallas import tpu as pltpu


def _round_up(x, m):
    return ((x + m - 1) // m) * m


def _cdiv(a, b):
    return (a + b - 1) // b


def _largest_divisor_tile(total, cap, granule=128):
    """Largest multiple of `granule` dividing `total` (a granule multiple), <= cap."""
    t = min(total, max(granule, (cap // granule) * granule))
    while total % t:
        t -= granule
    return t


def _effective_tiles(n, tile_rows, tile_k):
    """Clamp tiles to 128-multiples (full MXU passes; review: not 8-multiples)
    and split the parallel row axis into >= 2 tiles when the node count allows,
    so v7x's two TensorCores both get work."""
    n_128 = _round_up(n, 128)
    tile_k = max(128, min(_round_up(tile_k, 128), n_128))
    tile_rows = max(128, min(_round_up(tile_rows, 128), n_128))
    if n <= tile_rows and n >= 256:
        tile_rows = _round_up(_cdiv(n, 2), 128)
    return tile_rows, tile_k


def _compiler_params(dimension_semantics, vmem_limit_bytes):
    kw = dict(dimension_semantics=dimension_semantics)
    if vmem_limit_bytes is not None:
        kw["vmem_limit_bytes"] = vmem_limit_bytes
    return pltpu.CompilerParams(**kw)


def build_adj_block_table(adj, *, tile_rows=512, tile_k=512):
    """Host-side, one-time precompute of the adjacency block-sparsity table.

    Returns (table[int32 (n_row_tiles, max_cnt)], counts[int32 (n_row_tiles,)],
    max_cnt): per adjacency row tile, the column-block indices that hold at
    least one nonzero.  Cache this (together with a bf16-cast adjacency) across
    calls / layers -- the adjacency is fixed in a GCN.
    """
    n = adj.shape[0]
    tile_rows, tile_k = _effective_tiles(n, tile_rows, tile_k)
    nrt, nkt = _cdiv(n, tile_rows), _cdiv(n, tile_k)
    nz_mask = np.asarray(adj != 0)
    nz = np.zeros((nrt, nkt), dtype=bool)
    for i in range(nrt):
        rows = nz_mask[i * tile_rows:(i + 1) * tile_rows]
        for k in range(nkt):
            nz[i, k] = bool(rows[:, k * tile_k:(k + 1) * tile_k].any())
    counts = nz.sum(axis=1).astype(np.int32)
    max_cnt = max(int(counts.max()), 1)
    table = np.zeros((nrt, max_cnt), dtype=np.int32)
    for i in range(nrt):
        idx = np.flatnonzero(nz[i]).astype(np.int32)
        table[i, :idx.size] = idx
        if idx.size:                        # filler slots: re-point at the last
            table[i, idx.size:] = idx[-1]   # valid block (skipped via pl.when)
    return jnp.asarray(table), jnp.asarray(counts), max_cnt


# ---------------------------------------------------------------------------
# Stage 1: support = X @ W   (row x fout tiled; writes compute dtype directly;
# zeroes the rows >= n of the over-allocated support so stage 2 sees finite 0s)
# ---------------------------------------------------------------------------
def _xw_kernel(x_ref, w_ref, o_ref, *, n_valid, block_rows, mask_rows):
    acc = jnp.dot(x_ref[...], w_ref[...], preferred_element_type=jnp.float32)
    if mask_rows:
        rows = lax.broadcasted_iota(jnp.int32, acc.shape, 0) + pl.program_id(0) * block_rows
        acc = jnp.where(rows < n_valid, acc, jnp.zeros_like(acc))
    o_ref[...] = acc.astype(o_ref.dtype)


# ---------------------------------------------------------------------------
# Stage 2: out = adj @ support (+ bias)
# grid = (row tiles [parallel], nonzero-K slots [arbitrary])
# Scalar-prefetched block table selects which adjacency column-block each K
# slot refers to; pl.when skips slots beyond this row tile's nonzero count.
# ---------------------------------------------------------------------------
def _aggregate_kernel(tbl_ref, cnt_ref, adj_ref, s_ref, b_ref, o_ref, *scratch,
                      n, tile_k, support_resident, acc_in_out, add_bias, mask_tail):
    i = pl.program_id(0)
    k = pl.program_id(1)
    acc_ref = o_ref if acc_in_out else scratch[0]

    @pl.when(k == 0)
    def _init():
        acc_ref[...] = jnp.zeros_like(acc_ref)

    @pl.when(k < cnt_ref[i])
    def _compute():
        kb = tbl_ref[i, k]                       # actual adjacency column-block
        adj_t = adj_ref[...]
        if mask_tail:
            # Columns >= n of the last adjacency block are undefined (no pad
            # pass in the wrapper); zero them so garbage never hits the MXU.
            cols = lax.broadcasted_iota(jnp.int32, adj_t.shape, 1) + kb * tile_k
            adj_t = jnp.where(cols < n, adj_t, jnp.zeros_like(adj_t))
        if support_resident:
            start = pl.multiple_of(kb * tile_k, 128)
            s = s_ref[pl.ds(start, tile_k), :]   # slice the resident support
        else:
            s = s_ref[...]
        acc_ref[...] += jnp.dot(adj_t, s, preferred_element_type=jnp.float32)

    if add_bias or not acc_in_out:
        @pl.when(k == pl.num_programs(1) - 1)
        def _finalize():
            res = acc_ref[...]
            if add_bias:
                res = res + b_ref[...]
            o_ref[...] = res.astype(o_ref.dtype)


def graph_convolution(
    x,
    adj,
    weight,
    bias=None,
    *,
    tile_rows=512,          # adj row tile (raise to 1024 on v6e with more VMEM)
    tile_k=512,             # adj column tile (K of the aggregation matmul)
    lane_pad=128,           # pad out_features up to this lane multiple
    compute_dtype=jnp.bfloat16,   # adj/support streaming dtype; acc stays f32
    adj_block_table=None,   # optional (table, counts, max_cnt) from build_adj_block_table
    support_resident_bytes=4 * 1024 * 1024,  # keep support VMEM-resident if <= this
    adj_buffer_count=None,  # e.g. 3 -> pl.Buffered(3) on the adj stream
    vmem_limit_bytes=None,  # raise above scoped default for 1024 tiles (v5e/v6e)
):
    """Pallas GCN layer: output = adj @ (x @ weight) + bias.

    Pass a *pre-cast* (cached) bf16 adjacency and a cached block table for best
    performance -- both are per-graph constants in a GCN.
    """
    n, fin = x.shape
    fin_w, fout = weight.shape
    assert fin == fin_w and adj.shape == (n, n)
    out_dtype = x.dtype
    if compute_dtype is None:
        compute_dtype = out_dtype

    # TODO(synk): when fin < fout, reassociate to (adj @ X) @ W so the N^2
    # aggregation streams the smaller intermediate (not done here).
    # TODO(synk): fp8 (v7x) / int8-with-scales (v5e/v6e) adjacency quantization
    # would halve HBM traffic again vs bf16; not implemented.

    fout_p = _round_up(fout, lane_pad)                 # lane-dense output
    tile_rows, tile_k = _effective_tiles(n, tile_rows, tile_k)
    n_row_tiles = _cdiv(n, tile_rows)
    n_k_tiles = _cdiv(n, tile_k)
    n_sup_rows = n_k_tiles * tile_k                    # alloc only, never padded via jnp.pad
    mask_tail = (n % tile_k) != 0

    # Cheap lane padding of the small per-layer parameters (never the N^2 adj).
    w_p = weight if fout_p == fout else jnp.pad(weight, ((0, 0), (0, fout_p - fout)))
    if bias is not None:
        b_p = jnp.pad(bias.reshape(1, fout).astype(jnp.float32),
                      ((0, 0), (0, fout_p - fout)))
    else:
        b_p = jnp.zeros((1, fout_p), jnp.float32)
    add_bias = bias is not None

    # Adjacency in the streaming dtype.  Callers should pass a cached pre-cast
    # adjacency; this fallback cast costs a full N^2 pass if they do not.
    adj_c = adj if adj.dtype == compute_dtype else adj.astype(compute_dtype)

    # Block-sparsity table (identity table == dense).
    if adj_block_table is None:
        tbl = jnp.tile(jnp.arange(n_k_tiles, dtype=jnp.int32)[None, :], (n_row_tiles, 1))
        cnt = jnp.full((n_row_tiles,), n_k_tiles, jnp.int32)
        n_kslots = n_k_tiles
    else:
        tbl, cnt, n_kslots = adj_block_table
        assert tbl.shape == (n_row_tiles, n_kslots) and cnt.shape == (n_row_tiles,), (
            "adj_block_table was built with different tile sizes")

    # --- Stage 1: support = X @ W  (written directly in compute_dtype) -------
    tile_fout = _largest_divisor_tile(fout_p, 1024)
    xw_kernel = functools.partial(_xw_kernel, n_valid=n, block_rows=tile_k,
                                  mask_rows=mask_tail)
    support = pl.pallas_call(
        xw_kernel,
        out_shape=jax.ShapeDtypeStruct((n_sup_rows, fout_p), compute_dtype),
        grid_spec=pltpu.PrefetchScalarGridSpec(
            num_scalar_prefetch=0,
            grid=(n_sup_rows // tile_k, fout_p // tile_fout),
            in_specs=[
                pl.BlockSpec((tile_k, fin), lambda i, j: (i, 0)),
                pl.BlockSpec((fin, tile_fout), lambda i, j: (0, j)),
            ],
            out_specs=pl.BlockSpec((tile_k, tile_fout), lambda i, j: (i, j)),
        ),
        compiler_params=_compiler_params(("parallel", "parallel"), vmem_limit_bytes),
    )(x, w_p)
    # TODO(synk): fin is kept fully resident per block; very wide input features
    # would additionally need a K(=fin) accumulation axis in stage 1.

    # --- Stage 2: out = adj @ support (+ bias) --------------------------------
    support_resident = (n_sup_rows * fout_p * support.dtype.itemsize
                        <= support_resident_bytes)
    acc_in_out = (out_dtype == jnp.float32)

    adj_spec_kwargs = {}
    if adj_buffer_count is not None and adj_buffer_count != 2:
        adj_spec_kwargs["pipeline_mode"] = pl.Buffered(adj_buffer_count)
    adj_spec = pl.BlockSpec((tile_rows, tile_k),
                            lambda i, k, tbl, cnt: (i, tbl[i, k]),
                            **adj_spec_kwargs)
    if support_resident:
        s_spec = pl.BlockSpec((n_sup_rows, fout_p), lambda i, k, tbl, cnt: (0, 0))
    else:
        s_spec = pl.BlockSpec((tile_k, fout_p), lambda i, k, tbl, cnt: (tbl[i, k], 0))

    agg_kernel = functools.partial(
        _aggregate_kernel, n=n, tile_k=tile_k, support_resident=support_resident,
        acc_in_out=acc_in_out, add_bias=add_bias, mask_tail=mask_tail)
    scratch = [] if acc_in_out else [pltpu.VMEM((tile_rows, fout_p), jnp.float32)]

    out_p = pl.pallas_call(
        agg_kernel,
        out_shape=jax.ShapeDtypeStruct((n, fout_p), out_dtype),
        grid_spec=pltpu.PrefetchScalarGridSpec(
            num_scalar_prefetch=2,
            grid=(n_row_tiles, n_kslots),
            in_specs=[
                adj_spec,
                s_spec,
                pl.BlockSpec((1, fout_p), lambda i, k, tbl, cnt: (0, 0)),
            ],
            out_specs=pl.BlockSpec((tile_rows, fout_p), lambda i, k, tbl, cnt: (i, 0)),
            scratch_shapes=scratch,
        ),
        compiler_params=_compiler_params(("parallel", "arbitrary"), vmem_limit_bytes),
    )(tbl, cnt, adj_c, support, b_p)

    return out_p if fout_p == fout else out_p[:, :fout]


def init_params(key, in_features, out_features, with_bias=True):
    """Deterministic re-implementation of GraphConvolution.reset_parameters."""
    stdv = 1.0 / math.sqrt(out_features)
    k_w, k_b = jax.random.split(key)
    weight = jax.random.uniform(
        k_w, (in_features, out_features), jnp.float32, minval=-stdv, maxval=stdv)
    bias = None
    if with_bias:
        bias = jax.random.uniform(
            k_b, (out_features,), jnp.float32, minval=-stdv, maxval=stdv)
    return weight, bias


if __name__ == "__main__":
    # Small GCN-like problem: 300 nodes (tile-unaligned on purpose),
    # 64 input features -> 32 output features.
    n_nodes, in_features, out_features = 300, 64, 32

    key = jax.random.PRNGKey(0)
    k_x, k_adj, k_param = jax.random.split(key, 3)

    x = jax.random.normal(k_x, (n_nodes, in_features), jnp.float32)

    # Symmetric row-normalized dense adjacency with self loops (typical GCN input).
    # TODO(synk): torch.spmm's true sparse (CSR) path has no element-level Pallas
    # equivalent here; the adjacency is dense with block-level sparsity skipping.
    a = (jax.random.uniform(k_adj, (n_nodes, n_nodes)) < 0.05).astype(jnp.float32)
    a = jnp.maximum(a, a.T) + jnp.eye(n_nodes, dtype=jnp.float32)
    adj = a / jnp.sum(a, axis=1, keepdims=True)

    weight, bias = init_params(k_param, in_features, out_features, with_bias=True)

    # High-precision reference so the reference itself is not the sloppy one.
    ref = jnp.dot(adj, jnp.dot(x, weight, precision="highest"),
                  precision="highest") + bias

    # ---- f32 path (dense identity table): tight semantics check -------------
    out_f32 = graph_convolution(x, adj, weight, bias, compute_dtype=jnp.float32)
    out_f32 = jax.block_until_ready(out_f32)
    assert out_f32.shape == (n_nodes, out_features)
    assert jnp.allclose(out_f32, ref, atol=1e-3, rtol=1e-3), "f32 mismatch vs reference"

    # ---- bf16 path: adjacency cast hoisted (cached) + block-sparsity table --
    adj_bf16 = adj.astype(jnp.bfloat16)       # one-time cast, cached by the caller
    adj_table = build_adj_block_table(adj)    # one-time host precompute, cached
    out_bf16 = graph_convolution(x, adj_bf16, weight, bias,
                                 compute_dtype=jnp.bfloat16,
                                 adj_block_table=adj_table)
    out_bf16 = jax.block_until_ready(out_bf16)
    assert out_bf16.shape == (n_nodes, out_features)
    assert jnp.allclose(out_bf16, ref, atol=5e-2, rtol=5e-2), "bf16 mismatch vs reference"

    print("KERNEL_OK")
</pallas_src>

<mosaic_0001>
module attributes {stable_mosaic.version = 11 : i64} {
  func.func @_xw_kernel(%arg0: i32, %arg1: i32, %arg2: memref<384x64xf32, #tpu.memory_space<vmem>>, %arg3: memref<64x128xf32, #tpu.memory_space<vmem>>, %arg4: memref<384x128xf32, #tpu.memory_space<vmem>>) attributes {dimension_semantics = [#tpu.dimension_semantics<parallel>, #tpu.dimension_semantics<parallel>], iteration_bounds = array<i64: 1, 1>, scalar_prefetch = 0 : i64, scratch_operands = 0 : i64, tpu.core_type = #tpu.core_type<tc>, window_params = [{transform_indices = @transform_0, window_bounds = array<i64: 384, 64>}, {transform_indices = @transform_1, window_bounds = array<i64: 64, 128>}, {transform_indices = @transform_2, window_bounds = array<i64: 384, 128>}]} {
    %c0 = arith.constant 0 : index
    %c0_0 = arith.constant 0 : index
    %0 = vector.load %arg2[%c0, %c0_0] : memref<384x64xf32, #tpu.memory_space<vmem>>, vector<384x64xf32>
    %c0_1 = arith.constant 0 : index
    %c0_2 = arith.constant 0 : index
    %1 = vector.load %arg3[%c0_1, %c0_2] : memref<64x128xf32, #tpu.memory_space<vmem>>, vector<64x128xf32>
    %cst = arith.constant dense<0.000000e+00> : vector<384x128xf32>
    %2 = tpu.matmul %0, %1, %cst {dimension_numbers = #tpu.dot_dimension_numbers<[1], [0], [0], [1], [0, 0, 1, 1], [], []>} : vector<384x64xf32>, vector<64x128xf32>, vector<384x128xf32> -> vector<384x128xf32>
    %3 = tpu.iota {dimensions = array<i32: 0>} : vector<384x128xi32>
    %c384_i32 = arith.constant 384 : i32
    %4 = arith.muli %arg0, %c384_i32 : i32
    %5 = vector.broadcast %4 : i32 to vector<384x128xi32>
    %6 = arith.addi %3, %5 : vector<384x128xi32>
    %c300_i32 = arith.constant 300 : i32
    %7 = vector.broadcast %c300_i32 : i32 to vector<384x128xi32>
    %8 = arith.cmpi slt, %6, %7 : vector<384x128xi32>
    %cst_3 = arith.constant 0.000000e+00 : f32
    %9 = vector.broadcast %cst_3 : f32 to vector<384x128xf32>
    %10 = arith.select %8, %2, %9 : vector<384x128xi1>, vector<384x128xf32>
    %c0_4 = arith.constant 0 : index
    %c0_5 = arith.constant 0 : index
    %11 = vector.load %arg4[%c0_4, %c0_5] : memref<384x128xf32, #tpu.memory_space<vmem>>, vector<384x128xf32>
    tpu.vector_store %arg4[%c0_4, %c0_5], %10 {strides = array<i32>} : memref<384x128xf32, #tpu.memory_space<vmem>>, vector<384x128xf32>,
    return
  }
  func.func @transform_0(%arg0: i32, %arg1: i32) -> (i32, i32) {
    %c0_i32 = arith.constant 0 : i32
    %c0_i32_0 = arith.constant 0 : i32
    return %arg0, %c0_i32 : i32, i32
  }
  func.func @transform_1(%arg0: i32, %arg1: i32) -> (i32, i32) {
    %c0_i32 = arith.constant 0 : i32
    %c0_i32_0 = arith.constant 0 : i32
    return %c0_i32, %arg1 : i32, i32
  }
  func.func @transform_2(%arg0: i32, %arg1: i32) -> (i32, i32) {
    %c0_i32 = arith.constant 0 : i32
    return %arg0, %arg1 : i32, i32
  }
}

</mosaic_0001>

<bundles_post_ra>
// kernel: tpu_custom_call.1
= control target key start
LH: loop header
LB: loop body
LE: loop exit
PB: predicated region body
PF: predicated region fallthrough
CT: control target
= control target key end

     0   :  { %vm68_vm0 = vcmask 523264   ;;  %s1268_s0 = inlined_call_operand.vmem [shape: f32[300,64], index: 0, kind: input, shape index: {}]   ;;  %s1269_s1 = inlined_call_operand.vmem [shape: f32[64,128], index: 1, kind: input, shape index: {}]   ;;  %s1270_s2 = inlined_call_operand.hbm [shape: f32[384,128], index: 2, kind: output, shape index: {}]  }
   0x1   :  { %v60_v0 = vld [vmem:[%s1269_s1] sm:$0xff]  ;;  %v61_v1 = vld [vmem:[%s1269_s1 + $0x8] sm:$0xff]  ;;  %v62_v2 = vld [vmem:[%s1269_s1 + $0x10] sm:$0xff] }
   0x2   :  { %v969_v3 = vpack.c.bf16 %v61_v1, %v60_v0  ;;  %v63_v4 = vld [vmem:[%s1269_s1 + $0x18] sm:$0xff]  ;;  %v64_v6 = vld [vmem:[%s1269_s1 + $0x20] sm:$0xff]  ;;  %v65_v7 = vld [vmem:[%s1269_s1 + $0x28] sm:$0xff] }
   0x3   :  { %v973_v5 = vpack.c.bf16 %v63_v4, %v62_v2  ;;  %v12_v8 = vld [vmem:[%s1268_s0] sm:$0xff]  ;;  %v977_v10 = vpack.c.bf16 %v65_v7, %v64_v6  ;;  %v66_v11 = vld [vmem:[%s1269_s1 + $0x30] sm:$0xff]  ;;  %v67_v12 = vld [vmem:[%s1269_s1 + $0x38] sm:$0xff] }
   0x4   :  { %970 = vmatprep.subr.bf16.mxu0 %v969_v3  ;;  %985 = vmatprep.subr.bf16.mxu1 %v969_v3  ;;  %v36_v9 = vld [vmem:[%s1268_s0 + $0xc0] sm:$0xff]  ;;  %v981_v13 = vpack.c.bf16 %v67_v12, %v66_v11  ;;  %v13_v14 = vld [vmem:[%s1268_s0 + $0x8] sm:$0xff]  ;;  %v14_v16 = vld [vmem:[%s1268_s0 + $0x10] sm:$0xff] }
   0x5   :  { %972 = vmatpush3.bf16.msra.mxu0 %v969_v3  ;;  %989 = vmatpush3.bf16.msra.mxu1 %v969_v3  ;;  %v37_v15 = vld [vmem:[%s1268_s0 + $0xc8] sm:$0xff]  ;;  %v38_v17 = vld [vmem:[%s1268_s0 + $0xd0] sm:$0xff] }
   0x6   :  { %974 = vmatprep.subr.bf16.mxu0 %v973_v5  ;;  %986 = vmatprep.subr.bf16.mxu1 %v973_v5 }
   0x7   :  { %897 = vmatprep.mubr.msk.f32.mxu0 %vm68_vm0, %v12_v8  ;;  %933 = vmatprep.mubr.msk.f32.mxu1 %vm68_vm0, %v36_v9 }
   0x9   :  { %976 = vmatpush3.bf16.msra.mxu0 %v973_v5  ;;  %990 = vmatpush3.bf16.msra.mxu1 %v973_v5 }
   0xa   :  { %978 = vmatprep.subr.bf16.mxu0 %v977_v10  ;;  %987 = vmatprep.subr.bf16.mxu1 %v977_v10 }
   0xd   :  { %980 = vmatpush3.bf16.msra.mxu0 %v977_v10  ;;  %991 = vmatpush3.bf16.msra.mxu1 %v977_v10 }
   0xe   :  { %982 = vmatprep.subr.bf16.mxu0 %v981_v13  ;;  %988 = vmatprep.subr.bf16.mxu1 %v981_v13 }
  0x11   :  { %984 = vmatpush3.bf16.msra.mxu0 %v981_v13  ;;  %992 = vmatpush3.bf16.msra.mxu1 %v981_v13 }
  0x12   :  { %7 = vsyncpa [#allocation3], 0  ;;  %v15_v18 = vld [vmem:[%s1268_s0 + $0x18] sm:$0xff]  ;;  %v16_v20 = vld [vmem:[%s1268_s0 + $0x20] sm:$0xff]  ;;  %v1021_v60 = vmov 0.0   ;;  %v518_v9 = vlaneseq }
  0x13   :  { %v39_v19 = vld [vmem:[%s1268_s0 + $0xd8] sm:$0xff]  ;;  %v40_v21 = vld [vmem:[%s1268_s0 + $0xe0] sm:$0xff]  ;;  %v17_v22 = vld [vmem:[%s1268_s0 + $0x28] sm:$0xff]  ;;  %751 = vst [vmem:[#allocation2 + $0x130] sm:$0xff] %v1021_v60 }
  0x14   :  { %898 = vmatmul.mubr.msk.f32.vlgmr.msra.gmra.mrb[0].mxu0 %vm68_vm0, %v13_v14  ;;  %934 = vmatmul.mubr.msk.f32.vlgmr.msra.gmra.mrb[0].mxu1 %vm68_vm0, %v37_v15  ;;  %v41_v23 = vld [vmem:[%s1268_s0 + $0xe8] sm:$0xff]  ;;  %v18_v24 = vld [vmem:[%s1268_s0 + $0x30] sm:$0xff]  ;;  %v19_v26 = vld [vmem:[%s1268_s0 + $0x38] sm:$0xff]  ;;  %752 = vst [vmem:[#allocation2 + $0x138] sm:$0xff] %v1021_v60  ;;  %v519_v14 = vshrl.u32 %v518_v9, 7 }
  0x15   :  { %900 = vmatprep.mubr.msk.f32.mxu0 %vm68_vm0, %v14_v16  ;;  %936 = vmatprep.mubr.msk.f32.mxu1 %vm68_vm0, %v38_v17  ;;  %v42_v25 = vld [vmem:[%s1268_s0 + $0xf0] sm:$0xff]  ;;  %v43_v27 = vld [vmem:[%s1268_s0 + $0xf8] sm:$0xff]  ;;  %v20_v28 = vld [vmem:[%s1268_s0 + $0x40] sm:$0xff]  ;;  %753 = vst [vmem:[#allocation2 + $0x140] sm:$0xff] %v1021_v60 }
  0x16   :  { %v44_v29 = vld [vmem:[%s1268_s0 + $0x100] sm:$0xff]  ;;  %v21_v30 = vld [vmem:[%s1268_s0 + $0x48] sm:$0xff]  ;;  %v22_v32 = vld [vmem:[%s1268_s0 + $0x50] sm:$0xff]  ;;  %754 = vst [vmem:[#allocation2 + $0x148] sm:$0xff] %v1021_v60 }
  0x17   :  { %v45_v31 = vld [vmem:[%s1268_s0 + $0x108] sm:$0xff]  ;;  %v46_v33 = vld [vmem:[%s1268_s0 + $0x110] sm:$0xff]  ;;  %v23_v34 = vld [vmem:[%s1268_s0 + $0x58] sm:$0xff]  ;;  %755 = vst [vmem:[#allocation2 + $0x150] sm:$0xff] %v1021_v60 }
  0x18   :  { %901 = vmatmul.mubr.msk.f32.gmra.mrb[2].mxu0 %vm68_vm0, %v15_v18  ;;  %937 = vmatmul.mubr.msk.f32.gmra.mrb[2].mxu1 %vm68_vm0, %v39_v19  ;;  %v47_v35 = vld [vmem:[%s1268_s0 + $0x118] sm:$0xff]  ;;  %v24_v36 = vld [vmem:[%s1268_s0 + $0x60] sm:$0xff]  ;;  %v25_v38 = vld [vmem:[%s1268_s0 + $0x68] sm:$0xff]  ;;  %756 = vst [vmem:[#allocation2 + $0x158] sm:$0xff] %v1021_v60  ;;  %v556_v19 = vadd.s32 296, %v519_v14 }
  0x19   :  { %903 = vmatprep.mubr.msk.f32.mxu0 %vm68_vm0, %v16_v20  ;;  %939 = vmatprep.mubr.msk.f32.mxu1 %vm68_vm0, %v40_v21  ;;  %v48_v37 = vld [vmem:[%s1268_s0 + $0x120] sm:$0xff]  ;;  %v49_v39 = vld [vmem:[%s1268_s0 + $0x128] sm:$0xff]  ;;  %v26_v40 = vld [vmem:[%s1268_s0 + $0x70] sm:$0xff]  ;;  %757 = vst [vmem:[#allocation2 + $0x160] sm:$0xff] %v1021_v60 }
  0x1a   :  { %v50_v41 = vld [vmem:[%s1268_s0 + $0x130] sm:$0xff]  ;;  %v27_v42 = vld [vmem:[%s1268_s0 + $0x78] sm:$0xff]  ;;  %v28_v44 = vld [vmem:[%s1268_s0 + $0x80] sm:$0xff]  ;;  %758 = vst [vmem:[#allocation2 + $0x168] sm:$0xff] %v1021_v60  ;;  %vm654_vm1 = vcmp.lt.s32.totalorder %v556_v19, 300 }
  0x1b   :  { %v51_v43 = vld [vmem:[%s1268_s0 + $0x138] sm:$0xff]  ;;  %v52_v45 = vld [vmem:[%s1268_s0 + $0x140] sm:$0xff]  ;;  %v29_v46 = vld [vmem:[%s1268_s0 + $0x88] sm:$0xff]  ;;  %759 = vst [vmem:[#allocation2 + $0x170] sm:$0xff] %v1021_v60 }
  0x1c   :  { %904 = vmatmul.mubr.msk.f32.gmra.mrb[4].mxu0 %vm68_vm0, %v17_v22  ;;  %940 = vmatmul.mubr.msk.f32.gmra.mrb[4].mxu1 %vm68_vm0, %v41_v23  ;;  %v53_v47 = vld [vmem:[%s1268_s0 + $0x148] sm:$0xff]  ;;  %v30_v48 = vld [vmem:[%s1268_s0 + $0x90] sm:$0xff]  ;;  %v31_v50 = vld [vmem:[%s1268_s0 + $0x98] sm:$0xff]  ;;  %760 = vst [vmem:[#allocation2 + $0x178] sm:$0xff] %v1021_v60 }
  0x1d   :  { %906 = vmatprep.mubr.msk.f32.mxu0 %vm68_vm0, %v18_v24  ;;  %942 = vmatprep.mubr.msk.f32.mxu1 %vm68_vm0, %v42_v25  ;;  %v54_v49 = vld [vmem:[%s1268_s0 + $0x150] sm:$0xff]  ;;  %v55_v51 = vld [vmem:[%s1268_s0 + $0x158] sm:$0xff]  ;;  %v32_v52 = vld [vmem:[%s1268_s0 + $0xa0] sm:$0xff] }
  0x1e   :  { %v56_v53 = vld [vmem:[%s1268_s0 + $0x160] sm:$0xff]  ;;  %v33_v54 = vld [vmem:[%s1268_s0 + $0xa8] sm:$0xff]  ;;  %v34_v56 = vld [vmem:[%s1268_s0 + $0xb0] sm:$0xff] }
  0x1f   :  { %v57_v55 = vld [vmem:[%s1268_s0 + $0x168] sm:$0xff]  ;;  %v58_v57 = vld [vmem:[%s1268_s0 + $0x170] sm:$0xff]  ;;  %v35_v58 = vld [vmem:[%s1268_s0 + $0xb8] sm:$0xff] }
  0x20   :  { %907 = vmatmul.mubr.msk.f32.gmra.mrb[6].mxu0 %vm68_vm0, %v19_v26  ;;  %943 = vmatmul.mubr.msk.f32.gmra.mrb[6].mxu1 %vm68_vm0, %v43_v27  ;;  %v59_v59 = vld [vmem:[%s1268_s0 + $0x178] sm:$0xff]  ;;  %s1022_s0 = smov [#allocation2]  }
  0x21   :  { %909 = vmatprep.mubr.msk.f32.mxu0 %vm68_vm0, %v20_v28  ;;  %945 = vmatprep.mubr.msk.f32.mxu1 %vm68_vm0, %v44_v29  ;;  %s766_s5 = sshll.u32 %s1022_s0, 4  ;;  %s767_s5 = int_to_ptr.vmem [resolvable:$true] %s766_s5 }
  0x22   :  { %s997_s6 = scalar_lea.vmem %s767_s5, 6144  ;;  %p1002_p1 = scmp.lt.s32.totalorder %s767_s5, %s767_s5 }
  0x23   :  { %p998_p0 = scmp.ne.s32.totalorder %s767_s5, %s997_s6  ;;  %p1003_p2 = scmp.lt.s32.totalorder %s997_s6, %s997_s6 }
  0x24   :  { %910 = vmatmul.mubr.msk.f32.gmra.mrb[8].mxu0 %vm68_vm0, %v21_v30  ;;  %946 = vmatmul.mubr.msk.f32.gmra.mrb[8].mxu1 %vm68_vm0, %v45_v31 }
  0x25   :  { %912 = vmatprep.mubr.msk.f32.mxu0 %vm68_vm0, %v22_v32  ;;  %948 = vmatprep.mubr.msk.f32.mxu1 %vm68_vm0, %v46_v33  ;;  %p1004_p3 = por %p1003_p2, %p1002_p1 }
  0x27   :  { %p1005_p4 = pnand %p1004_p3, %p998_p0 }
  0x28   :  { %913 = vmatmul.mubr.msk.f32.gmra.mrb[10].mxu0 %vm68_vm0, %v23_v34  ;;  %949 = vmatmul.mubr.msk.f32.gmra.mrb[10].mxu1 %vm68_vm0, %v47_v35 }
  0x29   :  { %915 = vmatprep.mubr.msk.f32.mxu0 %vm68_vm0, %v24_v36  ;;  %951 = vmatprep.mubr.msk.f32.mxu1 %vm68_vm0, %v48_v37 }
  0x2c   :  { %916 = vmatmul.mubr.msk.f32.gmra.mrb[12].mxu0 %vm68_vm0, %v25_v38  ;;  %952 = vmatmul.mubr.msk.f32.gmra.mrb[12].mxu1 %vm68_vm0, %v49_v39 }
  0x2d   :  { %918 = vmatprep.mubr.msk.f32.mxu0 %vm68_vm0, %v26_v40  ;;  %954 = vmatprep.mubr.msk.f32.mxu1 %vm68_vm0, %v50_v41 }
  0x30   :  { %919 = vmatmul.mubr.msk.f32.gmra.mrb[14].mxu0 %vm68_vm0, %v27_v42  ;;  %955 = vmatmul.mubr.msk.f32.gmra.mrb[14].mxu1 %vm68_vm0, %v51_v43 }
  0x31   :  { %921 = vmatprep.mubr.msk.f32.mxu0 %vm68_vm0, %v28_v44  ;;  %957 = vmatprep.mubr.msk.f32.mxu1 %vm68_vm0, %v52_v45 }
  0x34   :  { %922 = vmatmul.mubr.msk.f32.gmra.mrb[16].mxu0 %vm68_vm0, %v29_v46  ;;  %958 = vmatmul.mubr.msk.f32.gmra.mrb[16].mxu1 %vm68_vm0, %v53_v47 }
  0x35   :  { %924 = vmatprep.mubr.msk.f32.mxu0 %vm68_vm0, %v30_v48  ;;  %960 = vmatprep.mubr.msk.f32.mxu1 %vm68_vm0, %v54_v49 }
  0x38   :  { %925 = vmatmul.mubr.msk.f32.gmra.mrb[18].mxu0 %vm68_vm0, %v31_v50  ;;  %961 = vmatmul.mubr.msk.f32.gmra.mrb[18].mxu1 %vm68_vm0, %v55_v51 }
  0x39   :  { %927 = vmatprep.mubr.msk.f32.mxu0 %vm68_vm0, %v32_v52  ;;  %963 = vmatprep.mubr.msk.f32.mxu1 %vm68_vm0, %v56_v53 }
  0x3c   :  { %928 = vmatmul.mubr.msk.f32.gmra.mrb[20].mxu0 %vm68_vm0, %v33_v54  ;;  %964 = vmatmul.mubr.msk.f32.gmra.mrb[20].mxu1 %vm68_vm0, %v57_v55 }
  0x3d   :  { %930 = vmatprep.mubr.msk.f32.mxu0 %vm68_vm0, %v34_v56  ;;  %966 = vmatprep.mubr.msk.f32.mxu1 %vm68_vm0, %v58_v57 }
  0x40   :  { %931 = vmatmul.mubr.msk.f32.gmra.mrb[22].mxu0 %vm68_vm0, %v35_v58  ;;  %967 = vmatmul.mubr.msk.f32.gmra.mrb[22].mxu1 %vm68_vm0, %v59_v59 }
  0xe7   :  { %v899_v61 = vpop.f32.mrb[0].mxu0  ;;  %v935_v62 = vpop.f32.mrb[0].mxu1 }
  0xe8   :  { %714 = vst [vmem:[#allocation2 + $0x8] sm:$0xff] %v899_v61  ;;  %v279_v63 = vpop.f32.mrb[1].mxu0  ;;  %738 = vst [vmem:[#allocation2 + $0xc8] sm:$0xff] %v935_v62  ;;  %v399_v0 = vpop.f32.mrb[1].mxu1 }
  0xe9   :  { %713 = vst [vmem:[#allocation2] sm:$0xff] %v279_v63  ;;  %737 = vst [vmem:[#allocation2 + $0xc0] sm:$0xff] %v399_v0 }
  0xeb   :  { %v902_v1 = vpop.f32.mrb[2].mxu0  ;;  %v938_v2 = vpop.f32.mrb[2].mxu1 }
  0xec   :  { %716 = vst [vmem:[#allocation2 + $0x18] sm:$0xff] %v902_v1  ;;  %v289_v3 = vpop.f32.mrb[3].mxu0  ;;  %740 = vst [vmem:[#allocation2 + $0xd8] sm:$0xff] %v938_v2  ;;  %v409_v4 = vpop.f32.mrb[3].mxu1 }
  0xed   :  { %715 = vst [vmem:[#allocation2 + $0x10] sm:$0xff] %v289_v3  ;;  %739 = vst [vmem:[#allocation2 + $0xd0] sm:$0xff] %v409_v4 }
  0xef   :  { %v905_v5 = vpop.f32.mrb[4].mxu0  ;;  %v941_v6 = vpop.f32.mrb[4].mxu1 }
  0xf0   :  { %718 = vst [vmem:[#allocation2 + $0x28] sm:$0xff] %v905_v5  ;;  %v299_v7 = vpop.f32.mrb[5].mxu0  ;;  %742 = vst [vmem:[#allocation2 + $0xe8] sm:$0xff] %v941_v6  ;;  %v419_v8 = vpop.f32.mrb[5].mxu1 }
  0xf1   :  { %717 = vst [vmem:[#allocation2 + $0x20] sm:$0xff] %v299_v7  ;;  %741 = vst [vmem:[#allocation2 + $0xe0] sm:$0xff] %v419_v8 }
  0xf3   :  { %v908_v10 = vpop.f32.mrb[6].mxu0  ;;  %v944_v11 = vpop.f32.mrb[6].mxu1 }
  0xf4   :  { %720 = vst [vmem:[#allocation2 + $0x38] sm:$0xff] %v908_v10  ;;  %v309_v12 = vpop.f32.mrb[7].mxu0  ;;  %744 = vst [vmem:[#allocation2 + $0xf8] sm:$0xff] %v944_v11  ;;  %v429_v13 = vpop.f32.mrb[7].mxu1 }
  0xf5   :  { %719 = vst [vmem:[#allocation2 + $0x30] sm:$0xff] %v309_v12  ;;  %743 = vst [vmem:[#allocation2 + $0xf0] sm:$0xff] %v429_v13 }
  0xf7   :  { %v911_v15 = vpop.f32.mrb[8].mxu0  ;;  %v947_v16 = vpop.f32.mrb[8].mxu1 }
  0xf8   :  { %722 = vst [vmem:[#allocation2 + $0x48] sm:$0xff] %v911_v15  ;;  %v319_v17 = vpop.f32.mrb[9].mxu0  ;;  %746 = vst [vmem:[#allocation2 + $0x108] sm:$0xff] %v947_v16  ;;  %v439_v18 = vpop.f32.mrb[9].mxu1 }
  0xf9   :  { %721 = vst [vmem:[#allocation2 + $0x40] sm:$0xff] %v319_v17  ;;  %745 = vst [vmem:[#allocation2 + $0x100] sm:$0xff] %v439_v18 }
  0xfb   :  { %v914_v20 = vpop.f32.mrb[10].mxu0  ;;  %v950_v21 = vpop.f32.mrb[10].mxu1 }
  0xfc   :  { %724 = vst [vmem:[#allocation2 + $0x58] sm:$0xff] %v914_v20  ;;  %v329_v22 = vpop.f32.mrb[11].mxu0  ;;  %748 = vst [vmem:[#allocation2 + $0x118] sm:$0xff] %v950_v21  ;;  %v449_v23 = vpop.f32.mrb[11].mxu1 }
  0xfd   :  { %723 = vst [vmem:[#allocation2 + $0x50] sm:$0xff] %v329_v22  ;;  %747 = vst [vmem:[#allocation2 + $0x110] sm:$0xff] %v449_v23 }
  0xff   :  { %v917_v24 = vpop.f32.mrb[12].mxu0  ;;  %v953_v25 = vpop.f32.mrb[12].mxu1 }
 0x100   :  { %726 = vst [vmem:[#allocation2 + $0x68] sm:$0xff] %v917_v24  ;;  %v339_v26 = vpop.f32.mrb[13].mxu0  ;;  %v702_v27 = vsel %vm654_vm1, %v953_v25, 0.0  ;;  %v459_v28 = vpop.f32.mrb[13].mxu1 }
 0x101   :  { %725 = vst [vmem:[#allocation2 + $0x60] sm:$0xff] %v339_v26  ;;  %750 = vst [vmem:[#allocation2 + $0x128] sm:$0xff] %v702_v27 }
 0x102   :  { %749 = vst [vmem:[#allocation2 + $0x120] sm:$0xff] %v459_v28 }
 0x103   :  { %v920_v29 = vpop.f32.mrb[14].mxu0  ;;  %v956_v30 = vpop.f32.mrb[14].mxu1 }
 0x104   :  { %728 = vst [vmem:[#allocation2 + $0x78] sm:$0xff] %v920_v29  ;;  %v349_v31 = vpop.f32.mrb[15].mxu0  ;;  %v469_v32 = vpop.f32.mrb[15].mxu1 }
 0x105   :  { %727 = vst [vmem:[#allocation2 + $0x70] sm:$0xff] %v349_v31 }
 0x107   :  { %v923_v33 = vpop.f32.mrb[16].mxu0  ;;  %v959_v34 = vpop.f32.mrb[16].mxu1 }
 0x108   :  { %730 = vst [vmem:[#allocation2 + $0x88] sm:$0xff] %v923_v33  ;;  %v359_v35 = vpop.f32.mrb[17].mxu0  ;;  %v479_v36 = vpop.f32.mrb[17].mxu1 }
 0x109   :  { %729 = vst [vmem:[#allocation2 + $0x80] sm:$0xff] %v359_v35 }
 0x10b   :  { %v926_v37 = vpop.f32.mrb[18].mxu0  ;;  %v962_v38 = vpop.f32.mrb[18].mxu1 }
 0x10c   :  { %732 = vst [vmem:[#allocation2 + $0x98] sm:$0xff] %v926_v37  ;;  %v369_v39 = vpop.f32.mrb[19].mxu0  ;;  %v489_v40 = vpop.f32.mrb[19].mxu1 }
 0x10d   :  { %731 = vst [vmem:[#allocation2 + $0x90] sm:$0xff] %v369_v39 }
 0x10f   :  { %v929_v41 = vpop.f32.mrb[20].mxu0  ;;  %v965_v42 = vpop.f32.mrb[20].mxu1 }
 0x110   :  { %734 = vst [vmem:[#allocation2 + $0xa8] sm:$0xff] %v929_v41  ;;  %v379_v43 = vpop.f32.mrb[21].mxu0  ;;  %v499_v44 = vpop.f32.mrb[21].mxu1 }
 0x111   :  { %733 = vst [vmem:[#allocation2 + $0xa0] sm:$0xff] %v379_v43 }
 0x113   :  { %v932_v45 = vpop.f32.mrb[22].mxu0  ;;  %v968_v46 = vpop.f32.mrb[22].mxu1 }
 0x114   :  { %736 = vst [vmem:[#allocation2 + $0xb8] sm:$0xff] %v932_v45  ;;  %v389_v47 = vpop.f32.mrb[23].mxu0  ;;  %v509_v48 = vpop.f32.mrb[23].mxu1 }
 0x115   :  { %735 = vst [vmem:[#allocation2 + $0xb0] sm:$0xff] %v389_v47 }
 0x116   :  { %1008 = shalt.err (!%p1005_p4)
}
 0x117   :  { %s1009_s9 = scalar_lea.hbm %s1270_s2, 6144 }
 0x118   :  { %p1010_p5 = scmp.ne.s32.totalorder %s1270_s2, %s1009_s9  ;;  %p1013_p6 = scmp.lt.u32.totalorder %s1009_s9, %s1270_s2 }
 0x11a   :  { %p1015_p7 = pnand %p1013_p6, %p1010_p5 }
 0x11c   :  { %1018 = shalt.err (!%p1015_p7)
}
 0x11d   :  { %s1023_s14 = smov 128   ;;  %s1024_s15 = smov 8  }
 0x11e   :  { %772 = dma.vmem_to_hbm [thread:$0]  %s767_s5, 6144, %s1270_s2, [#allocation3], %s1023_s14, %s1023_s14, %s1024_s15  }
 0x11f   :  { %1019 = dma.done.wait [#allocation3], 6144  }
 0x120   :  { %1020 = vsyncadd [#allocation3], 4294961152 }
 0x121   :  { %776 = vsyncpa [#allocation3], 1 }

</bundles_post_ra>
